<compile_context>
chip_gen: v6e
topology: v6e:2x2x1
jax: 0.10.0
libtpu: 0.0.40
codegen_flags: <defaults>
</compile_context>

<pallas_src>
import functools

import jax
import jax.numpy as jnp
from jax.experimental import pallas as pl
from jax.experimental.pallas import tpu as pltpu


LAYER_DIMS = [(11, 256), (256, 128), (128, 64), (64, 32), (32, 6)]
BN_EPS = 1e-5
N_CLASSES = LAYER_DIMS[-1][1]
OUT_PAD = 128            # lane-dense padded logits width (multiple of 128)
MAX_TB = 2048            # batch tile cap; ~6-8 MiB peak VMEM at this size
SPLIT_MIN_B = 256        # force grid >= 2 above this batch (v7x dual-TC sharding)
VMEM_LIMIT_BYTES = 32 * 1024 * 1024   # fits v5e (128 MiB phys) and v7x (64 MiB phys)


def _round_up(n, m):
    return (n + m - 1) // m * m


def _cdiv(a, b):
    return (a + b - 1) // b


def _mlp_kernel(
    x_ref,
    w1_ref, b1_ref,
    w2_ref, b2_ref,
    w3_ref, b3_ref,
    w4_ref, b4_ref,
    w5_ref, b5_ref,
    o_ref,
):
    """Fused MLP forward for one batch tile: 5 bf16 matmuls (f32 acc, BN
    pre-folded) + f32 bias/ReLU.  Dropout = identity in eval mode."""

    def linear(h, w_ref, b_ref):
        # bf16 operands -> f32 accumulation on the MXU; bias add in f32.
        return (
            jnp.dot(h.astype(jnp.bfloat16), w_ref[...],
                    preferred_element_type=jnp.float32)
            + b_ref[...]
        )

    h = x_ref[...]                                  # f32 [tb, 11]
    h = jnp.maximum(linear(h, w1_ref, b1_ref), 0.0)
    h = jnp.maximum(linear(h, w2_ref, b2_ref), 0.0)
    h = jnp.maximum(linear(h, w3_ref, b3_ref), 0.0)
    h = jnp.maximum(linear(h, w4_ref, b4_ref), 0.0)

    # Layer 5: Linear(32, 6) padded to 128 lanes -> bf16 logits slab
    # (lane-dense unmasked stores; padding columns of w5/b5 are exactly zero).
    o_ref[...] = linear(h, w5_ref, b5_ref).astype(o_ref.dtype)


@functools.partial(jax.jit, static_argnames=("max_tb",))
def anomaly_classifier_forward(x, folded, *, max_tb=MAX_TB):
    """x: [B, 11] float32.  folded: tuple (w1,b1,...,w5,b5) with BN pre-folded,
    weights in bf16, and layer 5 zero-padded to OUT_PAD output columns.
    Returns bf16 logits [B, N_CLASSES]."""
    assert max_tb % 8 == 0 and max_tb >= 8, "max_tb must be a positive multiple of 8"
    B = x.shape[0]

    # Padding-aware tile selection: minimize zero-row MXU work.
    n_steps = _cdiv(B, max_tb)
    # v7x: guarantee >= 2 grid steps for mid/large batches so the "parallel"
    # axis shards across both TensorCores (harmless on single-TC v5e/v6e).
    if B > SPLIT_MIN_B and n_steps < 2:
        n_steps = 2
    tb = _round_up(_cdiv(B, n_steps), 8)
    b_pad = n_steps * tb
    if b_pad != B:
        x = jnp.pad(x, ((0, b_pad - B), (0, 0)))

    grid = (n_steps,)

    def _const_spec(shape):
        # Weights/biases: full-array block, constant index -> stays VMEM-resident.
        return pl.BlockSpec(shape, lambda i: (0,) * len(shape))

    in_specs = [pl.BlockSpec((tb, x.shape[1]), lambda i: (i, 0))]
    for arr in folded:
        in_specs.append(_const_spec(arr.shape))

    out = pl.pallas_call(
        _mlp_kernel,
        out_shape=jax.ShapeDtypeStruct((b_pad, OUT_PAD), jnp.bfloat16),
        grid=grid,
        in_specs=in_specs,
        out_specs=pl.BlockSpec((tb, OUT_PAD), lambda i: (i, 0)),
        compiler_params=pltpu.CompilerParams(
            dimension_semantics=("parallel",),      # megacore sharding on v7x
            vmem_limit_bytes=VMEM_LIMIT_BYTES,
        ),
    )(x, *folded)

    return out[:B, :N_CLASSES]


def init_params(key):
    """Deterministic init matching the PyTorch module's __init__:
    Linear weights Xavier-uniform, biases 0; BatchNorm1d gamma=1, beta=0,
    running_mean=0, running_var=1 (eval mode uses running stats)."""
    params = {}
    keys = jax.random.split(key, len(LAYER_DIMS))
    for li, ((din, dout), k) in enumerate(zip(LAYER_DIMS, keys), start=1):
        bound = jnp.sqrt(6.0 / (din + dout))
        # PyTorch stores weight as [out, in]; we store [in, out] (transposed)
        # so the kernel computes h @ W directly.
        params[f"w{li}"] = jax.random.uniform(
            k, (din, dout), dtype=jnp.float32, minval=-bound, maxval=bound)
        params[f"b{li}"] = jnp.zeros((dout,), jnp.float32)
        if li <= 4:
            params[f"gamma{li}"] = jnp.ones((dout,), jnp.float32)
            params[f"beta{li}"] = jnp.zeros((dout,), jnp.float32)
            params[f"mean{li}"] = jnp.zeros((dout,), jnp.float32)
            params[f"var{li}"] = jnp.ones((dout,), jnp.float32)
    return params


def fold_params(params):
    """Fold eval-mode BatchNorm into the Linear weights/biases, cast weights to
    bf16 (MXU operands), keep biases in f32, and zero-pad layer 5 to OUT_PAD
    output columns. Returns (w1,b1,...,w5,b5)."""
    folded = []
    for li, (_, dout) in enumerate(LAYER_DIMS, start=1):
        w = params[f"w{li}"]
        b = params[f"b{li}"]
        if li <= 4:
            scale = params[f"gamma{li}"] / jnp.sqrt(params[f"var{li}"] + BN_EPS)
            shift = params[f"beta{li}"] - params[f"mean{li}"] * scale
            w = w * scale[None, :]
            b = b * scale + shift
        else:
            # Pad logits layer to a lane-dense width; padding columns exactly 0.
            w = jnp.pad(w, ((0, 0), (0, OUT_PAD - dout)))
            b = jnp.pad(b, (0, OUT_PAD - dout))
        folded += [w.astype(jnp.bfloat16), b.reshape(1, -1).astype(jnp.float32)]
    return tuple(folded)


def _reference_forward(x, params):
    """Pure-JAX f32 reference: Linear + eval-mode BatchNorm + ReLU (dropout = id)."""
    h = x
    for li in range(1, 6):
        h = h @ params[f"w{li}"] + params[f"b{li}"]
        if li <= 4:
            scale = params[f"gamma{li}"] / jnp.sqrt(params[f"var{li}"] + BN_EPS)
            h = (h - params[f"mean{li}"]) * scale + params[f"beta{li}"]
            h = jnp.maximum(h, 0.0)
    return h


def _check(out, ref, name):
    out_f32 = out.astype(jnp.float32)
    # bf16 matmul operands + bf16 logits -> loose tolerance vs. the f32 reference.
    ok = jnp.allclose(out_f32, ref, atol=3e-2, rtol=3e-2)
    assert ok, (name, float(jnp.max(jnp.abs(out_f32 - ref))))


if __name__ == "__main__":
    key = jax.random.PRNGKey(0)
    k_param, k_x1, k_x2, k_x3 = jax.random.split(key, 4)

    params = init_params(k_param)
    folded = fold_params(params)

    # Small batch (grid = 1).
    batch = 8
    x = jax.random.normal(k_x1, (batch, 11), dtype=jnp.float32)
    out = jax.block_until_ready(anomaly_classifier_forward(x, folded))
    assert out.shape == (batch, N_CLASSES), out.shape
    _check(out, _reference_forward(x, params), "batch8")

    # Multi-step tiled/padded path (grid > 1, batch padding).
    batch2 = 200
    x2 = jax.random.normal(k_x2, (batch2, 11), dtype=jnp.float32)
    out2 = jax.block_until_ready(
        anomaly_classifier_forward(x2, folded, max_tb=64))
    assert out2.shape == (batch2, N_CLASSES), out2.shape
    _check(out2, _reference_forward(x2, params), "batch200")

    # Mid-size batch: exercises the forced >=2-step split (v7x dual-TC path)
    # and the padding-aware tile choice (tb = 152, b_pad = 304).
    batch3 = 300
    x3 = jax.random.normal(k_x3, (batch3, 11), dtype=jnp.float32)
    out3 = jax.block_until_ready(anomaly_classifier_forward(x3, folded))
    assert out3.shape == (batch3, N_CLASSES), out3.shape
    _check(out3, _reference_forward(x3, params), "batch300")

    print("KERNEL_OK")
</pallas_src>

<mosaic_0001>
module attributes {stable_mosaic.version = 11 : i64} {
  func.func @_mlp_kernel(%arg0: i32, %arg1: memref<8x11xf32, #tpu.memory_space<vmem>>, %arg2: memref<11x256xbf16, #tpu.memory_space<vmem>>, %arg3: memref<1x256xf32, #tpu.memory_space<vmem>>, %arg4: memref<256x128xbf16, #tpu.memory_space<vmem>>, %arg5: memref<1x128xf32, #tpu.memory_space<vmem>>, %arg6: memref<128x64xbf16, #tpu.memory_space<vmem>>, %arg7: memref<1x64xf32, #tpu.memory_space<vmem>>, %arg8: memref<64x32xbf16, #tpu.memory_space<vmem>>, %arg9: memref<1x32xf32, #tpu.memory_space<vmem>>, %arg10: memref<32x128xbf16, #tpu.memory_space<vmem>>, %arg11: memref<1x128xf32, #tpu.memory_space<vmem>>, %arg12: memref<8x128xbf16, #tpu.memory_space<vmem>>) attributes {dimension_semantics = [#tpu.dimension_semantics<parallel>], iteration_bounds = array<i64: 1>, scalar_prefetch = 0 : i64, scratch_operands = 0 : i64, tpu.core_type = #tpu.core_type<tc>, window_params = [{transform_indices = @transform_0, window_bounds = array<i64: 8, 11>}, {pipeline_mode = #tpu.pipeline_mode<synchronous>, transform_indices = @transform_1, window_bounds = array<i64: 11, 256>}, {pipeline_mode = #tpu.pipeline_mode<synchronous>, transform_indices = @transform_2, window_bounds = array<i64: 1, 256>}, {pipeline_mode = #tpu.pipeline_mode<synchronous>, transform_indices = @transform_3, window_bounds = array<i64: 256, 128>}, {pipeline_mode = #tpu.pipeline_mode<synchronous>, transform_indices = @transform_4, window_bounds = array<i64: 1, 128>}, {pipeline_mode = #tpu.pipeline_mode<synchronous>, transform_indices = @transform_5, window_bounds = array<i64: 128, 64>}, {pipeline_mode = #tpu.pipeline_mode<synchronous>, transform_indices = @transform_6, window_bounds = array<i64: 1, 64>}, {pipeline_mode = #tpu.pipeline_mode<synchronous>, transform_indices = @transform_7, window_bounds = array<i64: 64, 32>}, {pipeline_mode = #tpu.pipeline_mode<synchronous>, transform_indices = @transform_8, window_bounds = array<i64: 1, 32>}, {pipeline_mode = #tpu.pipeline_mode<synchronous>, transform_indices = @transform_9, window_bounds = array<i64: 32, 128>}, {pipeline_mode = #tpu.pipeline_mode<synchronous>, transform_indices = @transform_10, window_bounds = array<i64: 1, 128>}, {transform_indices = @transform_11, window_bounds = array<i64: 8, 128>}]} {
    %c0 = arith.constant 0 : index
    %c0_0 = arith.constant 0 : index
    %0 = vector.load %arg1[%c0, %c0_0] : memref<8x11xf32, #tpu.memory_space<vmem>>, vector<8x11xf32>
    %1 = arith.truncf %0 : vector<8x11xf32> to vector<8x11xbf16>
    %c0_1 = arith.constant 0 : index
    %c0_2 = arith.constant 0 : index
    %2 = vector.load %arg2[%c0_1, %c0_2] : memref<11x256xbf16, #tpu.memory_space<vmem>>, vector<11x256xbf16>
    %cst = arith.constant dense<0.000000e+00> : vector<8x256xf32>
    %3 = tpu.matmul %1, %2, %cst {dimension_numbers = #tpu.dot_dimension_numbers<[1], [0], [0], [1], [0, 0, 1, 1], [], []>} : vector<8x11xbf16>, vector<11x256xbf16>, vector<8x256xf32> -> vector<8x256xf32>
    %c0_3 = arith.constant 0 : index
    %c0_4 = arith.constant 0 : index
    %4 = vector.load %arg3[%c0_3, %c0_4] : memref<1x256xf32, #tpu.memory_space<vmem>>, vector<1x256xf32>
    %5 = vector.broadcast %4 : vector<1x256xf32> to vector<8x256xf32>
    %6 = arith.addf %3, %5 : vector<8x256xf32>
    %cst_5 = arith.constant 0.000000e+00 : f32
    %7 = vector.broadcast %cst_5 : f32 to vector<8x256xf32>
    %8 = arith.maximumf %6, %7 : vector<8x256xf32>
    %9 = arith.truncf %8 : vector<8x256xf32> to vector<8x256xbf16>
    %c0_6 = arith.constant 0 : index
    %c0_7 = arith.constant 0 : index
    %10 = vector.load %arg4[%c0_6, %c0_7] : memref<256x128xbf16, #tpu.memory_space<vmem>>, vector<256x128xbf16>
    %cst_8 = arith.constant dense<0.000000e+00> : vector<8x128xf32>
    %11 = tpu.matmul %9, %10, %cst_8 {dimension_numbers = #tpu.dot_dimension_numbers<[1], [0], [0], [1], [0, 0, 1, 1], [], []>} : vector<8x256xbf16>, vector<256x128xbf16>, vector<8x128xf32> -> vector<8x128xf32>
    %c0_9 = arith.constant 0 : index
    %c0_10 = arith.constant 0 : index
    %12 = vector.load %arg5[%c0_9, %c0_10] : memref<1x128xf32, #tpu.memory_space<vmem>>, vector<1x128xf32>
    %13 = vector.broadcast %12 : vector<1x128xf32> to vector<8x128xf32>
    %14 = arith.addf %11, %13 : vector<8x128xf32>
    %cst_11 = arith.constant 0.000000e+00 : f32
    %15 = vector.broadcast %cst_11 : f32 to vector<8x128xf32>
    %16 = arith.maximumf %14, %15 : vector<8x128xf32>
    %17 = arith.truncf %16 : vector<8x128xf32> to vector<8x128xbf16>
    %c0_12 = arith.constant 0 : index
    %c0_13 = arith.constant 0 : index
    %18 = vector.load %arg6[%c0_12, %c0_13] : memref<128x64xbf16, #tpu.memory_space<vmem>>, vector<128x64xbf16>
    %cst_14 = arith.constant dense<0.000000e+00> : vector<8x64xf32>
    %19 = tpu.matmul %17, %18, %cst_14 {dimension_numbers = #tpu.dot_dimension_numbers<[1], [0], [0], [1], [0, 0, 1, 1], [], []>} : vector<8x128xbf16>, vector<128x64xbf16>, vector<8x64xf32> -> vector<8x64xf32>
    %c0_15 = arith.constant 0 : index
    %c0_16 = arith.constant 0 : index
    %20 = vector.load %arg7[%c0_15, %c0_16] : memref<1x64xf32, #tpu.memory_space<vmem>>, vector<1x64xf32>
    %21 = vector.broadcast %20 : vector<1x64xf32> to vector<8x64xf32>
    %22 = arith.addf %19, %21 : vector<8x64xf32>
    %cst_17 = arith.constant 0.000000e+00 : f32
    %23 = vector.broadcast %cst_17 : f32 to vector<8x64xf32>
    %24 = arith.maximumf %22, %23 : vector<8x64xf32>
    %25 = arith.truncf %24 : vector<8x64xf32> to vector<8x64xbf16>
    %c0_18 = arith.constant 0 : index
    %c0_19 = arith.constant 0 : index
    %26 = vector.load %arg8[%c0_18, %c0_19] : memref<64x32xbf16, #tpu.memory_space<vmem>>, vector<64x32xbf16>
    %cst_20 = arith.constant dense<0.000000e+00> : vector<8x32xf32>
    %27 = tpu.matmul %25, %26, %cst_20 {dimension_numbers = #tpu.dot_dimension_numbers<[1], [0], [0], [1], [0, 0, 1, 1], [], []>} : vector<8x64xbf16>, vector<64x32xbf16>, vector<8x32xf32> -> vector<8x32xf32>
    %c0_21 = arith.constant 0 : index
    %c0_22 = arith.constant 0 : index
    %28 = vector.load %arg9[%c0_21, %c0_22] : memref<1x32xf32, #tpu.memory_space<vmem>>, vector<1x32xf32>
    %29 = vector.broadcast %28 : vector<1x32xf32> to vector<8x32xf32>
    %30 = arith.addf %27, %29 : vector<8x32xf32>
    %cst_23 = arith.constant 0.000000e+00 : f32
    %31 = vector.broadcast %cst_23 : f32 to vector<8x32xf32>
    %32 = arith.maximumf %30, %31 : vector<8x32xf32>
    %33 = arith.truncf %32 : vector<8x32xf32> to vector<8x32xbf16>
    %c0_24 = arith.constant 0 : index
    %c0_25 = arith.constant 0 : index
    %34 = vector.load %arg10[%c0_24, %c0_25] : memref<32x128xbf16, #tpu.memory_space<vmem>>, vector<32x128xbf16>
    %cst_26 = arith.constant dense<0.000000e+00> : vector<8x128xf32>
    %35 = tpu.matmul %33, %34, %cst_26 {dimension_numbers = #tpu.dot_dimension_numbers<[1], [0], [0], [1], [0, 0, 1, 1], [], []>} : vector<8x32xbf16>, vector<32x128xbf16>, vector<8x128xf32> -> vector<8x128xf32>
    %c0_27 = arith.constant 0 : index
    %c0_28 = arith.constant 0 : index
    %36 = vector.load %arg11[%c0_27, %c0_28] : memref<1x128xf32, #tpu.memory_space<vmem>>, vector<1x128xf32>
    %37 = vector.broadcast %36 : vector<1x128xf32> to vector<8x128xf32>
    %38 = arith.addf %35, %37 : vector<8x128xf32>
    %39 = arith.truncf %38 : vector<8x128xf32> to vector<8x128xbf16>
    %c0_29 = arith.constant 0 : index
    %c0_30 = arith.constant 0 : index
    %40 = vector.load %arg12[%c0_29, %c0_30] : memref<8x128xbf16, #tpu.memory_space<vmem>>, vector<8x128xbf16>
    tpu.vector_store %arg12[%c0_29, %c0_30], %39 {strides = array<i32>} : memref<8x128xbf16, #tpu.memory_space<vmem>>, vector<8x128xbf16>,
    return
  }
  func.func @transform_0(%arg0: i32) -> (i32, i32) {
    %c0_i32 = arith.constant 0 : i32
    %c0_i32_0 = arith.constant 0 : i32
    return %arg0, %c0_i32 : i32, i32
  }
  func.func @transform_1(%arg0: i32) -> (i32, i32) {
    %c0_i32 = arith.constant 0 : i32
    %c0_i32_0 = arith.constant 0 : i32
    %c0_i32_1 = arith.constant 0 : i32
    return %c0_i32, %c0_i32_0 : i32, i32
  }
  func.func @transform_2(%arg0: i32) -> (i32, i32) {
    %c0_i32 = arith.constant 0 : i32
    %c0_i32_0 = arith.constant 0 : i32
    %c0_i32_1 = arith.constant 0 : i32
    return %c0_i32, %c0_i32_0 : i32, i32
  }
  func.func @transform_3(%arg0: i32) -> (i32, i32) {
    %c0_i32 = arith.constant 0 : i32
    %c0_i32_0 = arith.constant 0 : i32
    %c0_i32_1 = arith.constant 0 : i32
    return %c0_i32, %c0_i32_0 : i32, i32
  }
  func.func @transform_4(%arg0: i32) -> (i32, i32) {
    %c0_i32 = arith.constant 0 : i32
    %c0_i32_0 = arith.constant 0 : i32
    %c0_i32_1 = arith.constant 0 : i32
    return %c0_i32, %c0_i32_0 : i32, i32
  }
  func.func @transform_5(%arg0: i32) -> (i32, i32) {
    %c0_i32 = arith.constant 0 : i32
    %c0_i32_0 = arith.constant 0 : i32
    %c0_i32_1 = arith.constant 0 : i32
    return %c0_i32, %c0_i32_0 : i32, i32
  }
  func.func @transform_6(%arg0: i32) -> (i32, i32) {
    %c0_i32 = arith.constant 0 : i32
    %c0_i32_0 = arith.constant 0 : i32
    %c0_i32_1 = arith.constant 0 : i32
    return %c0_i32, %c0_i32_0 : i32, i32
  }
  func.func @transform_7(%arg0: i32) -> (i32, i32) {
    %c0_i32 = arith.constant 0 : i32
    %c0_i32_0 = arith.constant 0 : i32
    %c0_i32_1 = arith.constant 0 : i32
    return %c0_i32, %c0_i32_0 : i32, i32
  }
  func.func @transform_8(%arg0: i32) -> (i32, i32) {
    %c0_i32 = arith.constant 0 : i32
    %c0_i32_0 = arith.constant 0 : i32
    %c0_i32_1 = arith.constant 0 : i32
    return %c0_i32, %c0_i32_0 : i32, i32
  }
  func.func @transform_9(%arg0: i32) -> (i32, i32) {
    %c0_i32 = arith.constant 0 : i32
    %c0_i32_0 = arith.constant 0 : i32
    %c0_i32_1 = arith.constant 0 : i32
    return %c0_i32, %c0_i32_0 : i32, i32
  }
  func.func @transform_10(%arg0: i32) -> (i32, i32) {
    %c0_i32 = arith.constant 0 : i32
    %c0_i32_0 = arith.constant 0 : i32
    %c0_i32_1 = arith.constant 0 : i32
    return %c0_i32, %c0_i32_0 : i32, i32
  }
  func.func @transform_11(%arg0: i32) -> (i32, i32) {
    %c0_i32 = arith.constant 0 : i32
    %c0_i32_0 = arith.constant 0 : i32
    return %arg0, %c0_i32 : i32, i32
  }
}

</mosaic_0001>

<bundles_post_ra>
// kernel: anomaly_classifier_forward.1
= control target key start
LH: loop header
LB: loop body
LE: loop exit
PB: predicated region body
PF: predicated region fallthrough
CT: control target
= control target key end

     0   :  { %16 = vsyncpa [#allocation3], 0  ;;  %s1138_s0 = inlined_call_operand.hbm [shape: f32[8,11], index: 0, kind: input, shape index: {}]   ;;  %s1139_s1 = inlined_call_operand.vmem [shape: bf16[11,256], index: 1, kind: input, shape index: {}]   ;;  %s1140_s2 = inlined_call_operand.hbm [shape: f32[1,256], index: 2, kind: input, shape index: {}]   ;;  %s1141_s3 = inlined_call_operand.vmem [shape: bf16[256,128], index: 3, kind: input, shape index: {}]   ;;  %s1142_s4 = inlined_call_operand.hbm [shape: f32[1,128], index: 4, kind: input, shape index: {}]   ;;  %s1143_s5 = inlined_call_operand.vmem [shape: bf16[128,64], index: 5, kind: input, shape index: {}]   ;;  %s1144_s6 = inlined_call_operand.hbm [shape: f32[1,64], index: 6, kind: input, shape index: {}]   ;;  %s1145_s7 = inlined_call_operand.vmem [shape: bf16[64,32], index: 7, kind: input, shape index: {}]   ;;  %s1146_s8 = inlined_call_operand.hbm [shape: f32[1,32], index: 8, kind: input, shape index: {}]   ;;  %s1147_s9 = inlined_call_operand.vmem [shape: bf16[32,128], index: 9, kind: input, shape index: {}]   ;;  %s1148_s10 = inlined_call_operand.vmem [shape: f32[1,128], index: 10, kind: input, shape index: {}]   ;;  %s1149_s11 = inlined_call_operand.hbm [shape: bf16[8,128], index: 11, kind: output, shape index: {}]  }
   0x1   :  { %17 = vsyncpa [#allocation6], 0 }
   0x2   :  { %18 = vsyncpa [#allocation9], 0 }
   0x3   :  { %19 = vsyncpa [#allocation4], 0  ;;  %s931_s17 = smov [#allocation5]   ;;  %s932_s19 = smov [#allocation8]  }
   0x4   :  { %s38_s18 = sshll.u32 %s931_s17, 4  ;;  %s62_s20 = sshll.u32 %s932_s19, 4  ;;  %s39_s18 = int_to_ptr.vmem [resolvable:$true] %s38_s18  ;;  %s63_s20 = int_to_ptr.vmem [resolvable:$true] %s62_s20 }
   0x5   :  { %s811_s21 = scalar_lea.vmem %s39_s18, 32  ;;  %p816_p1 = scmp.lt.s32.totalorder %s39_s18, %s39_s18 }
   0x6   :  { %p812_p0 = scmp.ne.s32.totalorder %s39_s18, %s811_s21  ;;  %p817_p2 = scmp.lt.s32.totalorder %s811_s21, %s811_s21 }
   0x8   :  { %p818_p3 = por %p817_p2, %p816_p1 }
   0xa   :  { %p819_p4 = pnand %p818_p3, %p812_p0 }
   0xc   :  { %822 = shalt.err (!%p819_p4)
}
   0xd   :  { %41 = dma.hbm_to_vmem [thread:$0]  %s1140_s2, 32, %s39_s18, [#allocation6]  }
   0xe   :  { %s831_s24 = scalar_lea.vmem %s63_s20, 16  ;;  %s835_s25 = scalar_lea.vmem %s63_s20, 32 }
   0xf   :  { %p832_p5 = scmp.ne.s32.totalorder %s63_s20, %s831_s24  ;;  %p836_p6 = scmp.lt.s32.totalorder %s63_s20, %s63_s20 }
  0x10   :  { %p837_p7 = scmp.lt.s32.totalorder %s835_s25, %s831_s24 }
  0x12   :  { %p838_p8 = por %p837_p7, %p836_p6 }
  0x14   :  { %p839_p9 = pnand %p838_p8, %p832_p5 }
  0x16   :  { %842 = shalt.err (!%p839_p9)
}
  0x17   :  { %65 = dma.hbm_to_vmem [thread:$0]  %s1144_s6, 16, %s63_s20, [#allocation9]  }
  0x18   :  { %s933_s28 = smov [#allocation2]   ;;  %s934_s30 = smov [#allocation7]  }
  0x19   :  { %s26_s29 = sshll.u32 %s933_s28, 4  ;;  %s50_s12 = sshll.u32 %s934_s30, 4  ;;  %s27_s29 = int_to_ptr.vmem [resolvable:$true] %s26_s29  ;;  %s51_s12 = int_to_ptr.vmem [resolvable:$true] %s50_s12 }
  0x1a   :  { %s851_s13 = scalar_lea.vmem %s27_s29, 128  ;;  %p856_p11 = scmp.lt.s32.totalorder %s27_s29, %s27_s29 }
  0x1b   :  { %p852_p10 = scmp.ne.s32.totalorder %s27_s29, %s851_s13  ;;  %p857_p12 = scmp.lt.s32.totalorder %s851_s13, %s851_s13 }
  0x1d   :  { %p858_p13 = por %p857_p12, %p856_p11 }
  0x1f   :  { %p859_p0 = pnand %p858_p13, %p852_p10 }
  0x21   :  { %862 = shalt.err (!%p859_p0)
}
  0x22   :  { %29 = dma.hbm_to_vmem [thread:$0]  %s1138_s0, 128, %s27_s29, [#allocation3]  }
  0x23   :  { %s871_s15 = scalar_lea.vmem %s51_s12, 16  ;;  %s875_s6 = scalar_lea.vmem %s51_s12, 32 }
  0x24   :  { %p872_p1 = scmp.ne.s32.totalorder %s51_s12, %s871_s15  ;;  %p876_p2 = scmp.lt.s32.totalorder %s51_s12, %s51_s12 }
  0x25   :  { %p877_p3 = scmp.lt.s32.totalorder %s875_s6, %s871_s15 }
  0x27   :  { %p878_p4 = por %p877_p3, %p876_p2 }
  0x29   :  { %p879_p5 = pnand %p878_p4, %p872_p1 }
  0x2b   :  { %882 = shalt.err (!%p879_p5)
}
  0x2c   :  { %53 = dma.hbm_to_vmem [thread:$0]  %s1142_s4, 16, %s51_s12, [#allocation6]  }
  0x2d   :  { %s935_s18 = smov [#allocation10]  }
  0x2e   :  { %s74_s19 = sshll.u32 %s935_s18, 4  ;;  %s75_s19 = int_to_ptr.vmem [resolvable:$true] %s74_s19 }
  0x2f   :  { %s891_s20 = scalar_lea.vmem %s75_s19, 16  ;;  %s895_s21 = scalar_lea.vmem %s75_s19, 32 }
  0x30   :  { %p892_p6 = scmp.ne.s32.totalorder %s75_s19, %s891_s20  ;;  %p896_p7 = scmp.lt.s32.totalorder %s75_s19, %s75_s19 }
  0x31   :  { %p897_p8 = scmp.lt.s32.totalorder %s895_s21, %s891_s20 }
  0x33   :  { %p898_p9 = por %p897_p8, %p896_p7 }
  0x35   :  { %p899_p10 = pnand %p898_p9, %p892_p6 }
  0x37   :  { %902 = shalt.err (!%p899_p10)
}
  0x38   :  { %77 = dma.hbm_to_vmem [thread:$0]  %s1146_s8, 16, %s75_s19, [#allocation9]  }
  0x39   :  { %923 = dma.done.wait [#allocation3], 128  }
  0x3a   :  { %924 = vsyncadd [#allocation3], 4294967168 }
  0x3b   :  { %925 = dma.done.wait [#allocation6], 48  }
  0x3c   :  { %926 = vsyncadd [#allocation6], 4294967248 }
  0x3d   :  { %927 = dma.done.wait [#allocation9], 32  }
  0x3e   :  { %928 = vsyncadd [#allocation9], 4294967264  ;;  %vm126_vm0 = vcmask 1044480   ;;  %v936_v0 = vmov 0   ;;  %vm127_vm1 = vcmask 1045504   ;;  %v937_v1 = vmov 65535  }
  0x3f   :  { %168 = vmatprep.mubr.bf16.mxu0 %v936_v0  ;;  %v128_v2 = vsel %vm126_vm0, 4294967295, %v937_v1  ;;  %v770_v4 = vld [vmem:[%s1139_s1 + $0x4] ss:$8 sps:$4 sm:$0x3f]   ;;  %v773_v8 = vld [vmem:[%s1141_s3 + $0x78] sm:$0xff]   ;;  %v775_v12 = vld [vmem:[%s1141_s3 + $0x70] sm:$0xff]   ;;  %v104_v32 = vlaneseq }
  0x40   :  { %v129_v3 = vsel %vm127_vm1, %v128_v2, 0  ;;  %v772_v5 = vld [vmem:[%s1139_s1] ss:$8 sps:$4 sm:$0x3f]   ;;  %v774_v10 = vld [vmem:[%s1141_s3 + $0x38] sm:$0xff]   ;;  %681 = vmatprep.subr.bf16.mxu1 %v773_v8  ;;  %vm122_vm2 = vcmask 89088  }
  0x41   :  { %v98_v6 = vld [vmem:[#allocation2] sm:$0xff]  ;;  %v134_v7 = vand.u32 %v770_v4, %v129_v3  ;;  %v131_v9 = vand.u32 %v772_v5, %v129_v3  ;;  %682 = vmatpush3.bf16.msra.mxu1 %v774_v10  ;;  %v776_v13 = vld [vmem:[%s1141_s3 + $0x30] sm:$0xff]   ;;  %v777_v14 = vld [vmem:[%s1141_s3 + $0x68] sm:$0xff]   ;;  %v938_v27 = vmov 0.0   ;;  %v105_v33 = vshrl.u32 %v104_v32, 7  ;;  %s940_s2 = smov [#allocation11]  }
  0x42   :  { %v99_v11 = vpack.c.bf16 %v98_v6, %v98_v6  ;;  %683 = vmatprep.subr.bf16.mxu1 %v775_v12  ;;  %v778_v15 = vld [vmem:[%s1141_s3 + $0x28] sm:$0xff]   ;;  %v779_v16 = vld [vmem:[%s1141_s3 + $0x60] sm:$0xff]   ;;  %v781_v18 = vld [vmem:[%s1141_s3 + $0x58] sm:$0xff]   ;;  %vm939_vm3 = vmmov 0   ;;  %vm510_vm4 = vcmask 523264   ;;  %vm579_vm5 = vcmask 261120  }
  0x43   :  { %150 = vmatprep.subr.bf16.mxu0 %v134_v7  ;;  %v780_v17 = vld [vmem:[%s1141_s3 + $0x20] sm:$0xff]   ;;  %v782_v19 = vld [vmem:[%s1141_s3 + $0x18] sm:$0xff]   ;;  %v783_v20 = vld [vmem:[%s1141_s3 + $0x50] sm:$0xff]   ;;  %v106_v34 = vsub.s32 0, %v105_v33  ;;  %v110_v36 = vsub.s32 1, %v105_v33  ;;  %s631_s14 = sshll.u32 %s940_s2, 4  ;;  %s632_s14 = int_to_ptr.vmem [resolvable:$true] %s631_s14 }
  0x44   :  { %151 = vmatpush1.bf16.msra.mxu0 %v131_v9  ;;  %v784_v21 = vld [vmem:[%s1141_s3 + $0x10] sm:$0xff]   ;;  %v785_v22 = vld [vmem:[%s1141_s3 + $0x48] sm:$0xff]   ;;  %v787_v24 = vld [vmem:[%s1141_s3 + $0x40] sm:$0xff]   ;;  %p908_p12 = scmp.lt.s32.totalorder %s632_s14, %s632_s14 }
  0x45   :  { %684 = vmatpush3.bf16.msra.mxu1 %v776_v13  ;;  %v786_v23 = vld [vmem:[%s1141_s3 + $0x8] sm:$0xff]   ;;  %v788_v25 = vld [vmem:[%s1141_s3] sm:$0xff]   ;;  %v789_v26 = vld [vmem:[%s1143_s5 + $0x38] sm:$0xff]   ;;  %720 = vmatprep.subr.bf16.mxu0 %v938_v27 }
  0x46   :  { %685 = vmatprep.subr.bf16.mxu1 %v777_v14  ;;  %v790_v28 = vld [vmem:[%s1143_s5 + $0x30] sm:$0xff]   ;;  %v791_v29 = vld [vmem:[%s1143_s5 + $0x28] sm:$0xff]   ;;  %v792_v30 = vld [vmem:[%s1143_s5 + $0x20] sm:$0xff]  }
  0x47   :  { %644 = vmatmul.mubr.msk.bf16.vlgmr.msra.gmra.mxu0 %vm122_vm2, %v99_v11  ;;  %v793_v31 = vld [vmem:[%s1143_s5 + $0x18] sm:$0xff]   ;;  %v102_v35 = vld [vmem:[#allocation5] sm:$0x3]  ;;  %v794_v49 = vld [vmem:[%s1143_s5 + $0x10] sm:$0xff]  }
  0x48   :  { %721 = vmatpush3.bf16.msra.mxu0 %v789_v26  ;;  %v107_v37 = vrot.slane %v102_v35, %v106_v34  ;;  %v111_v38 = vrot.slane %v102_v35, %v110_v36  ;;  %v795_v50 = vld [vmem:[%s1143_s5 + $0x8] sm:$0xff]   ;;  %v796_v51 = vld [vmem:[%s1143_s5] sm:$0xff]   ;;  %736 = vmatprep.mubr.msk.bf16.mxu0 %vm939_vm3, %v938_v27  ;;  %v797_v52 = vld [vmem:[%s1145_s7 + $0x18] sm:$0xff]  }
  0x49   :  { %686 = vmatpush3.bf16.msra.mxu1 %v778_v15  ;;  %722 = vmatprep.subr.bf16.mxu0 %v938_v27  ;;  %v798_v53 = vld [vmem:[%s1145_s7 + $0x10] sm:$0xff]   ;;  %v645_v55 = vld [vmem:[#allocation7] ss:$0 sm:$0xff]  ;;  %v800_v0 = vld [vmem:[%s1145_s7] sm:$0xff]  }
  0x4a   :  { %687 = vmatprep.subr.bf16.mxu1 %v779_v16  ;;  %v799_v63 = vld [vmem:[%s1145_s7 + $0x8] sm:$0xff]   ;;  %v802_v10 = vld [vmem:[%s1147_s9] sm:$0xff]  }
  0x4b   :  { %v801_v1 = vld [vmem:[%s1147_s9 + $0x8] sm:$0xff]   ;;  %s903_s9 = scalar_lea.vmem %s632_s14, 64 }
  0x4c   :  { %723 = vmatpush3.bf16.msra.mxu0 %v790_v28  ;;  %v662_v2 = vld [vmem:[#allocation8] ss:$0 sm:$0xff]  ;;  %v671_v11 = vld [vmem:[#allocation10] ss:$0 sm:$0xff]  ;;  %p904_p11 = scmp.ne.s32.totalorder %s632_s14, %s903_s9  ;;  %p909_p13 = scmp.lt.s32.totalorder %s903_s9, %s903_s9 }
  0x4d   :  { %688 = vmatpush3.bf16.msra.mxu1 %v780_v17  ;;  %724 = vmatprep.subr.bf16.mxu0 %v938_v27 }
  0x4e   :  { %689 = vmatprep.subr.bf16.mxu1 %v781_v18  ;;  %p910_p0 = por %p909_p13, %p908_p12 }
  0x50   :  { %725 = vmatpush3.bf16.msra.mxu0 %v791_v29  ;;  %p911_p1 = pnand %p910_p0, %p904_p11 }
  0x51   :  { %690 = vmatpush3.bf16.msra.mxu1 %v782_v19  ;;  %726 = vmatprep.subr.bf16.mxu0 %v938_v27  ;;  %v677_v19 = vld [vmem:[%s1148_s10] ss:$0 sm:$0xff] }
  0x52   :  { %691 = vmatprep.subr.bf16.mxu1 %v783_v20 }
  0x54   :  { %727 = vmatpush3.bf16.msra.mxu0 %v792_v30 }
  0x55   :  { %692 = vmatpush3.bf16.msra.mxu1 %v784_v21  ;;  %728 = vmatprep.subr.bf16.mxu0 %v938_v27 }
  0x56   :  { %693 = vmatprep.subr.bf16.mxu1 %v785_v22 }
  0x58   :  { %729 = vmatpush3.bf16.msra.mxu0 %v793_v31 }
  0x59   :  { %694 = vmatpush3.bf16.msra.mxu1 %v786_v23  ;;  %730 = vmatprep.subr.bf16.mxu0 %v938_v27 }
  0x5a   :  { %695 = vmatprep.subr.bf16.mxu1 %v787_v24 }
  0x5c   :  { %731 = vmatpush3.bf16.msra.mxu0 %v794_v49 }
  0x5d   :  { %696 = vmatpush3.bf16.msra.mxu1 %v788_v25  ;;  %732 = vmatprep.subr.bf16.mxu0 %v938_v27 }
  0x5e   :  { %740 = vmatprep.subr.bf16.mxu1 %v938_v27 }
  0x60   :  { %733 = vmatpush3.bf16.msra.mxu0 %v795_v50 }
  0x61   :  { %734 = vmatprep.subr.bf16.mxu0 %v938_v27 }
  0x64   :  { %735 = vmatpush3.bf16.msra.mxu0 %v796_v51 }
  0x65   :  { %752 = vmatprep.subr.bf16.mxu0 %v938_v27 }
 0x107   :  { %v170_v39 = vpop.f32.mrf.mxu0 }
 0x108   :  { %v171_v40 = vadd.f32 %v170_v39, %v107_v37 }
 0x109   :  { %v172_v41 = vpop.f32.mrf.mxu0 }
 0x10a   :  { %v173_v42 = vadd.f32 %v172_v41, %v111_v38  ;;  %v177_v43 = vmax.f32 %v171_v40, 0.0 }
 0x10b   :  { %v174_v44 = vpop.f32.mrf.mxu0 }
 0x10c   :  { %v178_v45 = vmax.f32 %v173_v42, 0.0  ;;  %v179_v48 = vpack.c.bf16 %v177_v43, %v177_v43 }
 0x10d   :  { %v175_v46 = vpop.f32.mrf.mxu0 }
 0x10e   :  { %v180_v47 = vpack.c.bf16 %v178_v45, %v178_v45 }
 0x110   :  { %348 = vmatprep.mubr.bf16.mxu1 %v180_v47 }
 0x111   :  { %349 = vmatmul.mubr.bf16.vlgmr.msra.gmra.mxu1 %v179_v48 }
 0x112   :  { %748 = vmatprep.mubr.msk.bf16.mxu1 %vm939_vm3, %v938_v27  ;;  %741 = vmatpush3.bf16.msra.mxu1 %v797_v52 }
 0x113   :  { %742 = vmatprep.subr.bf16.mxu1 %v938_v27 }
 0x116   :  { %743 = vmatpush3.bf16.msra.mxu1 %v798_v53 }
 0x117   :  { %744 = vmatprep.subr.bf16.mxu1 %v938_v27 }
 0x11a   :  { %745 = vmatpush3.bf16.msra.mxu1 %v799_v63 }
 0x11b   :  { %746 = vmatprep.subr.bf16.mxu1 %v938_v27 }
 0x11e   :  { %747 = vmatpush3.bf16.msra.mxu1 %v800_v0 }
 0x1d1   :  { %v697_v54 = vpop.f32.mrf.mxu1 }
 0x1d3   :  { %v698_v56 = vpop.f32.mrf.mxu1 }
 0x1d4   :  { %v699_v57 = vadd.f32 %v698_v56, %v697_v54 }
 0x1d5   :  { %v700_v58 = vpop.f32.mrf.mxu1 }
 0x1d6   :  { %v351_v59 = vadd.f32 %v699_v57, %v645_v55 }
 0x1d7   :  { %v701_v60 = vpop.f32.mrf.mxu1 }
 0x1d8   :  { %v356_v61 = vmax.f32 %v351_v59, 0.0 }
 0x1da   :  { %v357_v62 = vpack.c.bf16 %v356_v61, %v356_v61 }
 0x1dc   :  { %737 = vmatmul.mubr.bf16.vlgmr.msra.gmra.mxu0 %v357_v62 }
 0x1dd   :  { %756 = vmatprep.mubr.msk.bf16.mxu0 %vm939_vm3, %v938_v27  ;;  %753 = vmatpush3.bf16.msra.mxu0 %v801_v1 }
 0x1de   :  { %754 = vmatprep.subr.bf16.mxu0 %v938_v27 }
 0x1e1   :  { %755 = vmatpush3.bf16.msra.mxu0 %v802_v10 }
 0x29c   :  { %v463_v3 = vpop.f32.mrf.mxu0 }
 0x29d   :  { %v464_v4 = vadd.f32 %v662_v2, %v463_v3 }
 0x29e   :  { %v738_v5 = vpop.f32.mrf.mxu0 }
 0x29f   :  { %v469_v6 = vmax.f32 %v464_v4, 0.0 }
 0x2a0   :  { %v466_v7 = vpop.f32.mrf.mxu0 }
 0x2a1   :  { %v470_v8 = vpack.c.bf16 %v469_v6, %v469_v6 }
 0x2a2   :  { %v739_v9 = vpop.f32.mrf.mxu0 }
 0x2a3   :  { %749 = vmatmul.mubr.msk.bf16.vlgmr.msra.gmra.mxu1 %vm510_vm4, %v470_v8 }
 0x363   :  { %v548_v12 = vpop.f32.mrf.mxu1 }
 0x364   :  { %v549_v13 = vadd.f32 %v671_v11, %v548_v12 }
 0x365   :  { %v750_v14 = vpop.f32.mrf.mxu1 }
 0x366   :  { %v554_v15 = vmax.f32 %v549_v13, 0.0 }
 0x367   :  { %v551_v16 = vpop.f32.mrf.mxu1 }
 0x368   :  { %v555_v17 = vpack.c.bf16 %v554_v15, %v554_v15 }
 0x369   :  { %v751_v18 = vpop.f32.mrf.mxu1 }
 0x36a   :  { %757 = vmatmul.mubr.msk.bf16.vlgmr.msra.gmra.mxu0 %vm579_vm5, %v555_v17 }
 0x42a   :  { %v617_v20 = vpop.f32.mrf.mxu0 }
 0x42b   :  { %v618_v21 = vadd.f32 %v677_v19, %v617_v20 }
 0x42c   :  { %v758_v22 = vpop.f32.mrf.mxu0 }
 0x42d   :  { %v623_v23 = vpack.c.bf16 %v618_v21, %v618_v21 }
 0x42e   :  { %v620_v24 = vpop.f32.mrf.mxu0 }
 0x42f   :  { %624 = vst [vmem:[#allocation11] sm:$0xf] %v623_v23 }
 0x430   :  { %v759_v25 = vpop.f32.mrf.mxu0 }
 0x431   :  { %914 = shalt.err (!%p911_p1)
}
 0x432   :  { %634 = dma.vmem_to_hbm [thread:$0]  %s632_s14, 64, %s1149_s11, [#allocation4]  }
 0x433   :  { %929 = dma.done.wait [#allocation4], 64  }
 0x434   :  { %930 = vsyncadd [#allocation4], 4294967232 }
 0x435   :  { %638 = vsyncpa [#allocation3], 1 }
 0x436   :  { %639 = vsyncpa [#allocation6], 1 }
 0x437   :  { %640 = vsyncpa [#allocation9], 1 }
 0x438   :  { %641 = vsyncpa [#allocation4], 1 }

</bundles_post_ra>
